<compile_context>
chip_gen: v7x
topology: tpu7x:2x2x1
jax: 0.10.0
libtpu: 0.0.40
codegen_flags: <defaults>
</compile_context>

<pallas_src>
import jax
import jax.numpy as jnp
import numpy as np
from jax.experimental import pallas as pl
from jax.experimental.pallas import tpu as pltpu

EPS = 1e-5        # nn.BatchNorm2d default eps
LANE = 128


def _round_up(x, m):
    return (x + m - 1) // m * m


def _tpu_budgets():
    """(vmem_limit_bytes, tile_m) chosen per TPU generation."""
    vmem = None
    try:
        info = pltpu.get_tpu_info()
        vmem = getattr(info, "vmem_capacity_bytes", None)
    except Exception:
        vmem = None
    if vmem is not None and vmem >= 96 * 1024 * 1024:
        return 64 * 1024 * 1024, 1024          # v5e / v6e: 128 MiB physical VMEM
    return 32 * 1024 * 1024, 512               # v7x (64 MiB physical) / unknown


def conv_stats_kernel(p_ref, w_ref, y_ref, stats_ref, acc_ref):
    """One (tile_m, C_pad) conv tile: K-reduction matmul + per-tile stats."""
    k = pl.program_id(1)

    @pl.when(k == 0)
    def _():
        acc_ref[...] = jnp.zeros_like(acc_ref)

    acc_ref[...] += jnp.dot(p_ref[...], w_ref[...],
                            preferred_element_type=jnp.float32)

    @pl.when(k == pl.num_programs(1) - 1)
    def _():
        y = acc_ref[...]
        y_ref[...] = y.astype(y_ref.dtype)                       # bf16 intermediate
        # Per-tile partial statistics; reduced across tiles in plain JAX.
        stats_ref[0:1, :] = jnp.sum(y, axis=0, keepdims=True)
        stats_ref[1:2, :] = jnp.sum(y * y, axis=0, keepdims=True)


def bn_relu_kernel(y_ref, sb_ref, o_ref):
    """Folded BatchNorm (scale/bias packed into one (2, C_pad) input) + ReLU."""
    y = y_ref[...].astype(jnp.float32)
    scale = sb_ref[0:1, :]
    bias = sb_ref[1:2, :]
    o_ref[...] = jnp.maximum(y * scale + bias, 0.0).astype(o_ref.dtype)


def _unet_block_down(x_nchw, w_oihw, gamma, beta):
    """Forward of UNetBlock(in_ch, out_ch, down=True, bn=True, dropout=False)."""
    N, Cin, H, W = x_nchw.shape
    Cout = w_oihw.shape[0]
    KH = KW = 4
    OH, OW = H // 2, W // 2
    M = N * OH * OW
    K = KH * KW * Cin

    vmem_limit, tile_m = _tpu_budgets()

    K_pad = _round_up(K, LANE)
    C_pad = _round_up(Cout, LANE)
    if M <= tile_m:
        tile_m = max(_round_up(M, 8), 8)
    M_pad = _round_up(M, tile_m)
    num_tiles = M_pad // tile_m

    # K reduction tiling (bounds resident weight block for huge late-UNet layers).
    tile_k = K_pad
    if tile_k > 2048:
        tile_k = max(t for t in range(128, 2048 + 1, 128) if K_pad % t == 0)
    num_k = K_pad // tile_k

    # ---- glue: NHWC layout + bf16 im2col patch extraction (pure reshuffling) ----
    x = jnp.transpose(x_nchw, (0, 2, 3, 1)).astype(jnp.bfloat16)   # NCHW -> NHWC, bf16 early
    xp = jnp.pad(x, ((0, 0), (1, 1), (1, 1), (0, 0)))              # conv pad = 1
    cols = []
    for kh in range(KH):
        for kw in range(KW):
            cols.append(xp[:, kh:kh + 2 * OH:2, kw:kw + 2 * OW:2, :])
    patches = jnp.stack(cols, axis=3)                              # (N, OH, OW, KH*KW, Cin)
    P = patches.reshape(M, K)
    P = jnp.pad(P, ((0, M_pad - M), (0, K_pad - K)))               # bf16 throughout

    # PyTorch weight (Cout, Cin, KH, KW) -> (KH*KW*Cin, Cout), bf16, zero-padded.
    Wm = jnp.transpose(w_oihw, (2, 3, 1, 0)).reshape(K, Cout).astype(jnp.bfloat16)
    Wm = jnp.pad(Wm, ((0, K_pad - K), (0, C_pad - Cout)))

    # ---- pass 1: conv tiles (parallel over M, reduce over K) + per-tile stats ----
    y_full, stats_part = pl.pallas_call(
        conv_stats_kernel,
        out_shape=(
            jax.ShapeDtypeStruct((M_pad, C_pad), jnp.bfloat16),
            jax.ShapeDtypeStruct((num_tiles, 2, C_pad), jnp.float32),
        ),
        grid=(num_tiles, num_k),
        in_specs=[
            pl.BlockSpec((tile_m, tile_k), lambda i, k: (i, k)),
            pl.BlockSpec((tile_k, C_pad), lambda i, k: (k, 0)),
        ],
        out_specs=(
            pl.BlockSpec((tile_m, C_pad), lambda i, k: (i, 0)),
            pl.BlockSpec((None, 2, C_pad), lambda i, k: (i, 0, 0)),
        ),
        scratch_shapes=[pltpu.VMEM((tile_m, C_pad), jnp.float32)],
        compiler_params=pltpu.CompilerParams(
            dimension_semantics=("parallel", "arbitrary"),
            vmem_limit_bytes=vmem_limit,
        ),
    )(P, Wm)

    # ---- glue: fold training-mode BatchNorm into per-channel scale/bias ----
    stats = jnp.sum(stats_part, axis=0)                    # (2, C_pad), tiny
    inv_m = 1.0 / float(M)                                 # true row count (pad rows are zero)
    mean = stats[0] * inv_m
    var = jnp.maximum(stats[1] * inv_m - mean * mean, 0.0)
    inv_std = jax.lax.rsqrt(var + EPS)
    gamma_pad = jnp.pad(gamma.astype(jnp.float32), (0, C_pad - Cout))
    beta_pad = jnp.pad(beta.astype(jnp.float32), (0, C_pad - Cout))
    scale = gamma_pad * inv_std
    bias = beta_pad - mean * scale
    sb = jnp.stack([scale, bias], axis=0)                  # single (2, C_pad) input stream

    # ---- pass 2: normalize + ReLU, output aliased onto the y buffer ----
    out_pad = pl.pallas_call(
        bn_relu_kernel,
        out_shape=jax.ShapeDtypeStruct((M_pad, C_pad), jnp.bfloat16),
        grid=(num_tiles,),
        in_specs=[
            pl.BlockSpec((tile_m, C_pad), lambda i: (i, 0)),
            pl.BlockSpec((2, C_pad), lambda i: (0, 0)),
        ],
        out_specs=pl.BlockSpec((tile_m, C_pad), lambda i: (i, 0)),
        input_output_aliases={0: 0},
        compiler_params=pltpu.CompilerParams(
            dimension_semantics=("parallel",),
            vmem_limit_bytes=vmem_limit,
        ),
    )(y_full, sb)

    out = out_pad[:M, :Cout].astype(jnp.float32).reshape(N, OH, OW, Cout)
    return jnp.transpose(out, (0, 3, 1, 2))                # NHWC -> NCHW (PyTorch convention)


unet_block_down = jax.jit(_unet_block_down)


if __name__ == "__main__":
    key = jax.random.PRNGKey(0)
    k1, k2, k3, k4 = jax.random.split(key, 4)

    N, Cin, Cout, H, W = 2, 4, 8, 16, 16
    x = jax.random.normal(k1, (N, Cin, H, W), dtype=jnp.float32)
    # Conv2d weight shape (out_channels, in_channels, 4, 4); deterministic synthetic init.
    w = jax.random.normal(k2, (Cout, Cin, 4, 4), dtype=jnp.float32) * 0.1
    gamma = jax.random.uniform(k3, (Cout,), dtype=jnp.float32, minval=0.5, maxval=1.5)
    beta = jax.random.normal(k4, (Cout,), dtype=jnp.float32) * 0.1

    y = jax.block_until_ready(unet_block_down(x, w, gamma, beta))

    # Pure-JAX f32 reference for sanity checking.
    dn = jax.lax.conv_dimension_numbers(x.shape, w.shape, ("NCHW", "OIHW", "NCHW"))
    y_conv = jax.lax.conv_general_dilated(
        x, w, window_strides=(2, 2), padding=((1, 1), (1, 1)), dimension_numbers=dn
    )
    mean = y_conv.mean(axis=(0, 2, 3), keepdims=True)
    var = ((y_conv - mean) ** 2).mean(axis=(0, 2, 3), keepdims=True)
    y_hat = (y_conv - mean) * jax.lax.rsqrt(var + EPS)
    y_ref = jnp.maximum(
        y_hat * gamma.reshape(1, -1, 1, 1) + beta.reshape(1, -1, 1, 1), 0.0
    )

    assert y.shape == (N, Cout, H // 2, W // 2)
    # bf16 matmul operands + bf16 intermediate/output -> loosened tolerance vs f32 reference.
    np.testing.assert_allclose(np.asarray(y), np.asarray(y_ref), rtol=5e-2, atol=3e-2)
    print("KERNEL_OK")
</pallas_src>

<mosaic_0001>
module attributes {stable_mosaic.version = 11 : i64} {
  func.func @conv_stats_kernel(%arg0: i32, %arg1: i32, %arg2: memref<128x128xbf16, #tpu.memory_space<vmem>>, %arg3: memref<128x128xbf16, #tpu.memory_space<vmem>>, %arg4: memref<128x128xbf16, #tpu.memory_space<vmem>>, %arg5: memref<1x2x128xf32, #tpu.memory_space<vmem>>, %arg6: memref<128x128xf32, #tpu.memory_space<vmem>>) attributes {dimension_semantics = [#tpu.dimension_semantics<parallel>, #tpu.dimension_semantics<arbitrary>], iteration_bounds = array<i64: 1, 1>, scalar_prefetch = 0 : i64, scratch_operands = 1 : i64, tpu.core_type = #tpu.core_type<tc>, window_params = [{transform_indices = @transform_0, window_bounds = array<i64: 128, 128>}, {transform_indices = @transform_1, window_bounds = array<i64: 128, 128>}, {transform_indices = @transform_2, window_bounds = array<i64: 128, 128>}, {transform_indices = @transform_3, window_bounds = array<i64: 1, 2, 128>}]} {
    %c0_i32 = arith.constant 0 : i32
    %0 = arith.cmpi eq, %arg1, %c0_i32 : i32
    %1 = arith.extui %0 : i1 to i32
    %c0_i32_0 = arith.constant 0 : i32
    %2 = arith.cmpi ne, %1, %c0_i32_0 : i32
    scf.if %2 {
      %cst_10 = arith.constant 0.000000e+00 : f32
      %12 = vector.broadcast %cst_10 : f32 to vector<128x128xf32>
      %c0_11 = arith.constant 0 : index
      %c0_12 = arith.constant 0 : index
      %13 = vector.load %arg6[%c0_11, %c0_12] : memref<128x128xf32, #tpu.memory_space<vmem>>, vector<128x128xf32>
      tpu.vector_store %arg6[%c0_11, %c0_12], %12 {strides = array<i32>} : memref<128x128xf32, #tpu.memory_space<vmem>>, vector<128x128xf32>,
    } else {
    }
    %c0 = arith.constant 0 : index
    %c0_1 = arith.constant 0 : index
    %3 = vector.load %arg6[%c0, %c0_1] : memref<128x128xf32, #tpu.memory_space<vmem>>, vector<128x128xf32>
    %c0_2 = arith.constant 0 : index
    %c0_3 = arith.constant 0 : index
    %4 = vector.load %arg2[%c0_2, %c0_3] : memref<128x128xbf16, #tpu.memory_space<vmem>>, vector<128x128xbf16>
    %c0_4 = arith.constant 0 : index
    %c0_5 = arith.constant 0 : index
    %5 = vector.load %arg3[%c0_4, %c0_5] : memref<128x128xbf16, #tpu.memory_space<vmem>>, vector<128x128xbf16>
    %cst = arith.constant dense<0.000000e+00> : vector<128x128xf32>
    %6 = tpu.matmul %4, %5, %cst {dimension_numbers = #tpu.dot_dimension_numbers<[1], [0], [0], [1], [0, 0, 1, 1], [], []>} : vector<128x128xbf16>, vector<128x128xbf16>, vector<128x128xf32> -> vector<128x128xf32>
    %7 = arith.addf %3, %6 : vector<128x128xf32>
    %c0_6 = arith.constant 0 : index
    %c0_7 = arith.constant 0 : index
    %8 = vector.load %arg6[%c0_6, %c0_7] : memref<128x128xf32, #tpu.memory_space<vmem>>, vector<128x128xf32>
    tpu.vector_store %arg6[%c0_6, %c0_7], %7 {strides = array<i32>} : memref<128x128xf32, #tpu.memory_space<vmem>>, vector<128x128xf32>,
    %c0_i32_8 = arith.constant 0 : i32
    %9 = arith.cmpi eq, %arg1, %c0_i32_8 : i32
    %10 = arith.extui %9 : i1 to i32
    %c0_i32_9 = arith.constant 0 : i32
    %11 = arith.cmpi ne, %10, %c0_i32_9 : i32
    scf.if %11 {
      %c0_10 = arith.constant 0 : index
      %c0_11 = arith.constant 0 : index
      %12 = vector.load %arg6[%c0_10, %c0_11] : memref<128x128xf32, #tpu.memory_space<vmem>>, vector<128x128xf32>
      %13 = arith.truncf %12 : vector<128x128xf32> to vector<128x128xbf16>
      %c0_12 = arith.constant 0 : index
      %c0_13 = arith.constant 0 : index
      %14 = vector.load %arg4[%c0_12, %c0_13] : memref<128x128xbf16, #tpu.memory_space<vmem>>, vector<128x128xbf16>
      tpu.vector_store %arg4[%c0_12, %c0_13], %13 {strides = array<i32>} : memref<128x128xbf16, #tpu.memory_space<vmem>>, vector<128x128xbf16>,
      %cst_14 = arith.constant dense<0.000000e+00> : vector<128xf32>
      %15 = vector.multi_reduction <add>, %12, %cst_14 [0] : vector<128x128xf32> to vector<128xf32>
      %16 = vector.shape_cast %15 : vector<128xf32> to vector<1x128xf32>
      %c0_15 = arith.constant 0 : index
      %c0_16 = arith.constant 0 : index
      %c0_17 = arith.constant 0 : index
      %17 = vector.load %arg5[%c0_15, %c0_16, %c0_17] : memref<1x2x128xf32, #tpu.memory_space<vmem>>, vector<1x1x128xf32>
      %18 = vector.shape_cast %17 : vector<1x1x128xf32> to vector<1x128xf32>
      %19 = vector.shape_cast %16 : vector<1x128xf32> to vector<1x1x128xf32>
      tpu.vector_store %arg5[%c0_15, %c0_16, %c0_17], %19 {strides = array<i32>} : memref<1x2x128xf32, #tpu.memory_space<vmem>>, vector<1x1x128xf32>,
      %20 = arith.mulf %12, %12 : vector<128x128xf32>
      %cst_18 = arith.constant dense<0.000000e+00> : vector<128xf32>
      %21 = vector.multi_reduction <add>, %20, %cst_18 [0] : vector<128x128xf32> to vector<128xf32>
      %22 = vector.shape_cast %21 : vector<128xf32> to vector<1x128xf32>
      %c0_19 = arith.constant 0 : index
      %c1 = arith.constant 1 : index
      %c0_20 = arith.constant 0 : index
      %23 = vector.load %arg5[%c0_19, %c1, %c0_20] : memref<1x2x128xf32, #tpu.memory_space<vmem>>, vector<1x1x128xf32>
      %24 = vector.shape_cast %23 : vector<1x1x128xf32> to vector<1x128xf32>
      %25 = vector.shape_cast %22 : vector<1x128xf32> to vector<1x1x128xf32>
      tpu.vector_store %arg5[%c0_19, %c1, %c0_20], %25 {strides = array<i32>} : memref<1x2x128xf32, #tpu.memory_space<vmem>>, vector<1x1x128xf32>,
    } else {
    }
    return
  }
  func.func @transform_0(%arg0: i32, %arg1: i32) -> (i32, i32) {
    %c0_i32 = arith.constant 0 : i32
    return %arg0, %arg1 : i32, i32
  }
  func.func @transform_1(%arg0: i32, %arg1: i32) -> (i32, i32) {
    %c0_i32 = arith.constant 0 : i32
    %c0_i32_0 = arith.constant 0 : i32
    return %arg1, %c0_i32 : i32, i32
  }
  func.func @transform_2(%arg0: i32, %arg1: i32) -> (i32, i32) {
    %c0_i32 = arith.constant 0 : i32
    %c0_i32_0 = arith.constant 0 : i32
    return %arg0, %c0_i32 : i32, i32
  }
  func.func @transform_3(%arg0: i32, %arg1: i32) -> (i32, i32, i32) {
    %c0_i32 = arith.constant 0 : i32
    %c0_i32_0 = arith.constant 0 : i32
    %c0_i32_1 = arith.constant 0 : i32
    return %arg0, %c0_i32, %c0_i32_0 : i32, i32, i32
  }
}

module attributes {stable_mosaic.version = 11 : i64} {
  func.func @bn_relu_kernel(%arg0: i32, %arg1: memref<128x128xbf16, #tpu.memory_space<vmem>>, %arg2: memref<2x128xf32, #tpu.memory_space<vmem>>, %arg3: memref<128x128xbf16, #tpu.memory_space<vmem>>) attributes {dimension_semantics = [#tpu.dimension_semantics<parallel>], iteration_bounds = array<i64: 1>, scalar_prefetch = 0 : i64, scratch_operands = 0 : i64, tpu.core_type = #tpu.core_type<tc>, window_params = [{transform_indices = @transform_0, window_bounds = array<i64: 128, 128>}, {pipeline_mode = #tpu.pipeline_mode<synchronous>, transform_indices = @transform_1, window_bounds = array<i64: 2, 128>}, {transform_indices = @transform_2, window_bounds = array<i64: 128, 128>}]} {
    %c0 = arith.constant 0 : index
    %c0_0 = arith.constant 0 : index
    %0 = vector.load %arg1[%c0, %c0_0] : memref<128x128xbf16, #tpu.memory_space<vmem>>, vector<128x128xbf16>
    %1 = arith.extf %0 : vector<128x128xbf16> to vector<128x128xf32>
    %c0_1 = arith.constant 0 : index
    %c0_2 = arith.constant 0 : index
    %2 = vector.load %arg2[%c0_1, %c0_2] : memref<2x128xf32, #tpu.memory_space<vmem>>, vector<1x128xf32>
    %c1 = arith.constant 1 : index
    %c0_3 = arith.constant 0 : index
    %3 = vector.load %arg2[%c1, %c0_3] : memref<2x128xf32, #tpu.memory_space<vmem>>, vector<1x128xf32>
    %4 = vector.broadcast %2 : vector<1x128xf32> to vector<128x128xf32>
    %5 = arith.mulf %1, %4 : vector<128x128xf32>
    %6 = vector.broadcast %3 : vector<1x128xf32> to vector<128x128xf32>
    %7 = arith.addf %5, %6 : vector<128x128xf32>
    %cst = arith.constant 0.000000e+00 : f32
    %8 = vector.broadcast %cst : f32 to vector<128x128xf32>
    %9 = arith.maximumf %7, %8 : vector<128x128xf32>
    %10 = arith.truncf %9 : vector<128x128xf32> to vector<128x128xbf16>
    %c0_4 = arith.constant 0 : index
    %c0_5 = arith.constant 0 : index
    %11 = vector.load %arg3[%c0_4, %c0_5] : memref<128x128xbf16, #tpu.memory_space<vmem>>, vector<128x128xbf16>
    tpu.vector_store %arg3[%c0_4, %c0_5], %10 {strides = array<i32>} : memref<128x128xbf16, #tpu.memory_space<vmem>>, vector<128x128xbf16>,
    return
  }
  func.func @transform_0(%arg0: i32) -> (i32, i32) {
    %c0_i32 = arith.constant 0 : i32
    %c0_i32_0 = arith.constant 0 : i32
    return %arg0, %c0_i32 : i32, i32
  }
  func.func @transform_1(%arg0: i32) -> (i32, i32) {
    %c0_i32 = arith.constant 0 : i32
    %c0_i32_0 = arith.constant 0 : i32
    %c0_i32_1 = arith.constant 0 : i32
    return %c0_i32, %c0_i32_0 : i32, i32
  }
  func.func @transform_2(%arg0: i32) -> (i32, i32) {
    %c0_i32 = arith.constant 0 : i32
    %c0_i32_0 = arith.constant 0 : i32
    return %arg0, %c0_i32 : i32, i32
  }
}

</mosaic_0001>

<bundles_post_ra>
// kernel: _unet_block_down.3
= control target key start
LH: loop header
LB: loop body
LE: loop exit
PB: predicated region body
PF: predicated region fallthrough
CT: control target
= control target key end

     0   :  { %s410_s0 = inlined_call_operand.vmem [shape: bf16[128,128], index: 0, kind: input, shape index: {}, may-alias: {0,2}]   ;;  %s411_s1 = inlined_call_operand.vmem [shape: f32[2,128], index: 1, kind: input, shape index: {}]   ;;  %s412_s2 = inlined_call_operand.vmem [shape: bf16[128,128], index: 2, kind: output, shape index: {}, may-alias: {0,2}]  }
   0x1   :  { %v220_v0 = vld [vmem:[%s410_s0] sm:$0xff]   ;;  %v291_v4 = vld [vmem:[%s410_s0 + $0x8] sm:$0xff]   ;;  %v292_v5 = vld [vmem:[%s410_s0 + $0x10] sm:$0xff]  }
   0x2   :  { %v326_v1 = vld [vmem:[%s411_s1] ss:$0 sm:$0xff]  ;;  %v221_v2 = vunpack.c.l.bf16 %v220_v0  ;;  %v222_v3 = vunpack.c.h.bf16 %v220_v0  ;;  %v293_v6 = vld [vmem:[%s410_s0 + $0x18] sm:$0xff]   ;;  %v340_v7 = vld [vmem:[%s411_s1 + $0x1] ss:$0 sm:$0xff]  ;;  %v225_v8 = vunpack.c.l.bf16 %v291_v4  ;;  %v226_v9 = vunpack.c.h.bf16 %v291_v4 }
   0x3   :  { %v229_v10 = vunpack.c.l.bf16 %v292_v5  ;;  %v230_v11 = vunpack.c.h.bf16 %v292_v5  ;;  %v233_v14 = vunpack.c.l.bf16 %v293_v6  ;;  %v234_v15 = vunpack.c.h.bf16 %v293_v6  ;;  %v294_v28 = vld [vmem:[%s410_s0 + $0x20] sm:$0xff]   ;;  %v295_v33 = vld [vmem:[%s410_s0 + $0x28] sm:$0xff]   ;;  %v296_v38 = vld [vmem:[%s410_s0 + $0x30] sm:$0xff]  }
   0x4   :  { %v49_v12 = vmul.f32 %v221_v2, %v326_v1  ;;  %v50_v13 = vmul.f32 %v222_v3, %v326_v1  ;;  %v51_v16 = vmul.f32 %v225_v8, %v326_v1  ;;  %v52_v17 = vmul.f32 %v226_v9, %v326_v1  ;;  %v297_v43 = vld [vmem:[%s410_s0 + $0x38] sm:$0xff]  }
   0x5   :  { %v53_v18 = vmul.f32 %v229_v10, %v326_v1  ;;  %v54_v19 = vmul.f32 %v230_v11, %v326_v1  ;;  %v55_v22 = vmul.f32 %v233_v14, %v326_v1  ;;  %v56_v23 = vmul.f32 %v234_v15, %v326_v1 }
   0x6   :  { %v69_v20 = vadd.f32 %v340_v7, %v49_v12  ;;  %v70_v21 = vadd.f32 %v340_v7, %v50_v13  ;;  %v71_v24 = vadd.f32 %v340_v7, %v51_v16  ;;  %v72_v25 = vadd.f32 %v340_v7, %v52_v17 }
   0x7   :  { %v73_v26 = vadd.f32 %v340_v7, %v53_v18  ;;  %v74_v27 = vadd.f32 %v340_v7, %v54_v19  ;;  %v75_v31 = vadd.f32 %v340_v7, %v55_v22  ;;  %v76_v32 = vadd.f32 %v340_v7, %v56_v23 }
   0x8   :  { %v85_v29 = vmax.f32 %v69_v20, 0.0  ;;  %v86_v30 = vmax.f32 %v70_v21, 0.0  ;;  %v87_v34 = vmax.f32 %v71_v24, 0.0  ;;  %v88_v35 = vmax.f32 %v72_v25, 0.0 }
   0x9   :  { %v89_v36 = vmax.f32 %v73_v26, 0.0  ;;  %v90_v37 = vmax.f32 %v74_v27, 0.0  ;;  %v91_v40 = vmax.f32 %v75_v31, 0.0  ;;  %v92_v41 = vmax.f32 %v76_v32, 0.0 }
   0xa   :  { %v254_v39 = vpack.c.bf16 %v86_v30, %v85_v29  ;;  %v237_v42 = vunpack.c.l.bf16 %v294_v28  ;;  %v259_v44 = vpack.c.bf16 %v88_v35, %v87_v34  ;;  %v238_v46 = vunpack.c.h.bf16 %v294_v28 }
   0xb   :  { %v264_v45 = vpack.c.bf16 %v90_v37, %v89_v36  ;;  %v241_v47 = vunpack.c.l.bf16 %v295_v33  ;;  %v269_v48 = vpack.c.bf16 %v92_v41, %v91_v40  ;;  %v242_v50 = vunpack.c.h.bf16 %v295_v33 }
   0xc   :  { %255 = vst [vmem:[%s412_s2] sm:$0xff] %v254_v39   ;;  %v57_v49 = vmul.f32 %v237_v42, %v326_v1  ;;  %v245_v51 = vunpack.c.l.bf16 %v296_v38  ;;  %298 = vst [vmem:[%s412_s2 + $0x8] sm:$0xff] %v259_v44   ;;  %v58_v52 = vmul.f32 %v238_v46, %v326_v1  ;;  %v246_v54 = vunpack.c.h.bf16 %v296_v38 }
   0xd   :  { %299 = vst [vmem:[%s412_s2 + $0x10] sm:$0xff] %v264_v45   ;;  %v59_v53 = vmul.f32 %v241_v47, %v326_v1  ;;  %v249_v55 = vunpack.c.l.bf16 %v297_v43  ;;  %300 = vst [vmem:[%s412_s2 + $0x18] sm:$0xff] %v269_v48   ;;  %v60_v57 = vmul.f32 %v242_v50, %v326_v1  ;;  %v250_v59 = vunpack.c.h.bf16 %v297_v43 }
   0xe   :  { %v77_v56 = vadd.f32 %v340_v7, %v57_v49  ;;  %v61_v58 = vmul.f32 %v245_v51, %v326_v1  ;;  %v78_v60 = vadd.f32 %v340_v7, %v58_v52  ;;  %v62_v62 = vmul.f32 %v246_v54, %v326_v1 }
   0xf   :  { %v79_v61 = vadd.f32 %v340_v7, %v59_v53  ;;  %v63_v63 = vmul.f32 %v249_v55, %v326_v1  ;;  %v80_v2 = vadd.f32 %v340_v7, %v60_v57  ;;  %v64_v4 = vmul.f32 %v250_v59, %v326_v1 }
  0x10   :  { %v93_v0 = vmax.f32 %v77_v56, 0.0  ;;  %v81_v3 = vadd.f32 %v340_v7, %v61_v58  ;;  %v94_v5 = vmax.f32 %v78_v60, 0.0  ;;  %v82_v8 = vadd.f32 %v340_v7, %v62_v62 }
  0x11   :  { %v95_v6 = vmax.f32 %v79_v61, 0.0  ;;  %v83_v9 = vadd.f32 %v340_v7, %v63_v63  ;;  %v96_v10 = vmax.f32 %v80_v2, 0.0  ;;  %v84_v12 = vadd.f32 %v340_v7, %v64_v4 }
  0x12   :  { %v97_v11 = vmax.f32 %v81_v3, 0.0  ;;  %v274_v13 = vpack.c.bf16 %v94_v5, %v93_v0  ;;  %v98_v14 = vmax.f32 %v82_v8, 0.0 }
  0x13   :  { %v99_v15 = vmax.f32 %v83_v9, 0.0  ;;  %v279_v16 = vpack.c.bf16 %v96_v10, %v95_v6  ;;  %v100_v17 = vmax.f32 %v84_v12, 0.0 }
  0x14   :  { %301 = vst [vmem:[%s412_s2 + $0x20] sm:$0xff] %v274_v13   ;;  %v284_v1 = vpack.c.bf16 %v98_v14, %v97_v11 }
  0x15   :  { %302 = vst [vmem:[%s412_s2 + $0x28] sm:$0xff] %v279_v16   ;;  %v289_v18 = vpack.c.bf16 %v100_v17, %v99_v15 }
  0x16   :  { %303 = vst [vmem:[%s412_s2 + $0x30] sm:$0xff] %v284_v1  }
  0x17   :  { %304 = vst [vmem:[%s412_s2 + $0x38] sm:$0xff] %v289_v18  }

// kernel: _unet_block_down.2
= control target key start
LH: loop header
LB: loop body
LE: loop exit
PB: predicated region body
PF: predicated region fallthrough
CT: control target
= control target key end

     0   :  { %s747_s1 = inlined_call_operand.vmem [shape: bf16[128,128], index: 1, kind: input, shape index: {}]   ;;  %s748_s0 = inlined_call_operand.vmem [shape: bf16[128,128], index: 0, kind: input, shape index: {}]   ;;  %s749_s2 = inlined_call_operand.vmem [shape: bf16[128,128], index: 2, kind: output, shape index: {0}]   ;;  %s750_s3 = inlined_call_operand.vmem [shape: f32[1,2,128], index: 3, kind: output, shape index: {1}]  }
   0x1   :  { %v633_v0 = vld [vmem:[%s747_s1] sm:$0xff]   ;;  %v634_v1 = vld [vmem:[%s747_s1 + $0x8] sm:$0xff]   ;;  %v635_v2 = vld [vmem:[%s747_s1 + $0x10] sm:$0xff]  }
   0x2   :  { %585 = vmatprep.subr.bf16.mxu0 %v633_v0  ;;  %617 = vmatprep.subr.bf16.mxu1 %v633_v0  ;;  %v636_v3 = vld [vmem:[%s747_s1 + $0x18] sm:$0xff]   ;;  %v641_v4 = vld [vmem:[%s748_s0] sm:$0xff]   ;;  %v638_v7 = vld [vmem:[%s747_s1 + $0x28] sm:$0xff]  }
   0x3   :  { %586 = vmatpush3.bf16.msra.mxu0 %v633_v0  ;;  %625 = vmatpush3.bf16.msra.mxu1 %v633_v0  ;;  %v637_v5 = vld [vmem:[%s747_s1 + $0x20] sm:$0xff]   ;;  %v639_v8 = vld [vmem:[%s747_s1 + $0x30] sm:$0xff]   ;;  %v640_v9 = vld [vmem:[%s747_s1 + $0x38] sm:$0xff]  }
   0x4   :  { %587 = vmatprep.subr.bf16.mxu0 %v634_v1  ;;  %618 = vmatprep.subr.bf16.mxu1 %v634_v1  ;;  %v645_v6 = vld [vmem:[%s748_s0 + $0x20] sm:$0xff]   ;;  %v642_v10 = vld [vmem:[%s748_s0 + $0x8] sm:$0xff]   ;;  %v643_v12 = vld [vmem:[%s748_s0 + $0x10] sm:$0xff]  }
   0x5   :  { %601 = vmatprep.mubr.bf16.mxu0 %v641_v4  ;;  %609 = vmatprep.mubr.bf16.mxu1 %v645_v6  ;;  %v646_v11 = vld [vmem:[%s748_s0 + $0x28] sm:$0xff]   ;;  %v647_v13 = vld [vmem:[%s748_s0 + $0x30] sm:$0xff]   ;;  %v644_v14 = vld [vmem:[%s748_s0 + $0x18] sm:$0xff]  }
   0x6   :  { %v648_v15 = vld [vmem:[%s748_s0 + $0x38] sm:$0xff]  }
   0x7   :  { %588 = vmatpush3.bf16.msra.mxu0 %v634_v1  ;;  %626 = vmatpush3.bf16.msra.mxu1 %v634_v1 }
   0x8   :  { %589 = vmatprep.subr.bf16.mxu0 %v635_v2  ;;  %619 = vmatprep.subr.bf16.mxu1 %v635_v2 }
   0xb   :  { %590 = vmatpush3.bf16.msra.mxu0 %v635_v2  ;;  %627 = vmatpush3.bf16.msra.mxu1 %v635_v2 }
   0xc   :  { %591 = vmatprep.subr.bf16.mxu0 %v636_v3  ;;  %620 = vmatprep.subr.bf16.mxu1 %v636_v3 }
   0xf   :  { %592 = vmatpush3.bf16.msra.mxu0 %v636_v3  ;;  %628 = vmatpush3.bf16.msra.mxu1 %v636_v3 }
  0x10   :  { %593 = vmatprep.subr.bf16.mxu0 %v637_v5  ;;  %621 = vmatprep.subr.bf16.mxu1 %v637_v5 }
  0x13   :  { %594 = vmatpush3.bf16.msra.mxu0 %v637_v5  ;;  %629 = vmatpush3.bf16.msra.mxu1 %v637_v5 }
  0x14   :  { %595 = vmatprep.subr.bf16.mxu0 %v638_v7  ;;  %622 = vmatprep.subr.bf16.mxu1 %v638_v7 }
  0x17   :  { %596 = vmatpush3.bf16.msra.mxu0 %v638_v7  ;;  %630 = vmatpush3.bf16.msra.mxu1 %v638_v7 }
  0x18   :  { %597 = vmatprep.subr.bf16.mxu0 %v639_v8  ;;  %623 = vmatprep.subr.bf16.mxu1 %v639_v8 }
  0x1b   :  { %598 = vmatpush3.bf16.msra.mxu0 %v639_v8  ;;  %631 = vmatpush3.bf16.msra.mxu1 %v639_v8 }
  0x1c   :  { %599 = vmatprep.subr.bf16.mxu0 %v640_v9  ;;  %624 = vmatprep.subr.bf16.mxu1 %v640_v9 }
  0x1f   :  { %600 = vmatpush3.bf16.msra.mxu0 %v640_v9  ;;  %632 = vmatpush3.bf16.msra.mxu1 %v640_v9 }
  0x22   :  { %602 = vmatmul.mubr.bf16.vlgmr.msra.gmra.mrb[0].mxu0 %v642_v10  ;;  %610 = vmatmul.mubr.bf16.vlgmr.msra.gmra.mrb[0].mxu1 %v646_v11 }
  0x23   :  { %605 = vmatprep.mubr.bf16.mxu0 %v643_v12  ;;  %613 = vmatprep.mubr.bf16.mxu1 %v647_v13 }
  0x2a   :  { %606 = vmatmul.mubr.bf16.gmra.mrb[4].mxu0 %v644_v14  ;;  %614 = vmatmul.mubr.bf16.gmra.mrb[4].mxu1 %v648_v15 }
  0xf5   :  { %v603_v16 = vpop.f32.mrb[0].mxu0  ;;  %v611_v17 = vpop.f32.mrb[0].mxu1 }
  0xf6   :  { %v212_v18 = vpop.f32.mrb[1].mxu0  ;;  %v244_v19 = vpop.f32.mrb[1].mxu1  ;;  %v430_v31 = vmul.f32 %v603_v16, %v603_v16  ;;  %v438_v3 = vmul.f32 %v611_v17, %v611_v17 }
  0xf7   :  { %v604_v20 = vpop.f32.mrb[2].mxu0  ;;  %v612_v21 = vpop.f32.mrb[2].mxu1  ;;  %v428_v22 = vmul.f32 %v212_v18, %v212_v18  ;;  %v436_v61 = vmul.f32 %v244_v19, %v244_v19 }
  0xf8   :  { %v530_v23 = vpack.c.bf16 %v604_v20, %v603_v16  ;;  %v215_v24 = vpop.f32.mrb[3].mxu0  ;;  %v550_v25 = vpack.c.bf16 %v612_v21, %v611_v17  ;;  %v247_v26 = vpop.f32.mrb[3].mxu1  ;;  %v431_v34 = vmul.f32 %v604_v20, %v604_v20  ;;  %v439_v6 = vmul.f32 %v612_v21, %v612_v21 }
  0xf9   :  { %v525_v27 = vpack.c.bf16 %v215_v24, %v212_v18  ;;  %v406_v28 = vadd.f32 %v215_v24, %v212_v18  ;;  %v429_v29 = vmul.f32 %v215_v24, %v215_v24  ;;  %v545_v30 = vpack.c.bf16 %v247_v26, %v244_v19 }
  0xfa   :  { %562 = vst [vmem:[%s749_s2 + $0x8] sm:$0xff] %v530_v23   ;;  %566 = vst [vmem:[%s749_s2 + $0x28] sm:$0xff] %v550_v25   ;;  %v437_v2 = vmul.f32 %v247_v26, %v247_v26 }
  0xfb   :  { %526 = vst [vmem:[%s749_s2] sm:$0xff] %v525_v27   ;;  %v407_v32 = vadd.f32 %v603_v16, %v406_v28  ;;  %v444_v33 = vadd.f32 %v429_v29, %v428_v22  ;;  %565 = vst [vmem:[%s749_s2 + $0x20] sm:$0xff] %v545_v30  }
  0xfd   :  { %v445_v35 = vadd.f32 %v444_v33, %v430_v31  ;;  %v607_v36 = vpop.f32.mrb[4].mxu0  ;;  %v408_v37 = vadd.f32 %v604_v20, %v407_v32  ;;  %v615_v38 = vpop.f32.mrb[4].mxu1 }
  0xfe   :  { %v228_v39 = vpop.f32.mrb[5].mxu0  ;;  %v260_v40 = vpop.f32.mrb[5].mxu1  ;;  %v434_v55 = vmul.f32 %v607_v36, %v607_v36  ;;  %v442_v15 = vmul.f32 %v615_v38, %v615_v38 }
  0xff   :  { %v409_v41 = vadd.f32 %v408_v37, %v228_v39  ;;  %v432_v42 = vmul.f32 %v228_v39, %v228_v39  ;;  %v446_v43 = vadd.f32 %v445_v35, %v431_v34  ;;  %v608_v44 = vpop.f32.mrb[6].mxu0  ;;  %v616_v45 = vpop.f32.mrb[6].mxu1  ;;  %v440_v9 = vmul.f32 %v260_v40, %v260_v40 }
 0x100   :  { %v540_v46 = vpack.c.bf16 %v608_v44, %v607_v36  ;;  %v231_v47 = vpop.f32.mrb[7].mxu0  ;;  %v560_v48 = vpack.c.bf16 %v616_v45, %v615_v38  ;;  %v263_v49 = vpop.f32.mrb[7].mxu1  ;;  %v435_v58 = vmul.f32 %v608_v44, %v608_v44 }
 0x101   :  { %v447_v50 = vadd.f32 %v446_v43, %v432_v42  ;;  %v535_v51 = vpack.c.bf16 %v231_v47, %v228_v39  ;;  %v410_v52 = vadd.f32 %v409_v41, %v231_v47  ;;  %v433_v53 = vmul.f32 %v231_v47, %v231_v47 }
 0x102   :  { %564 = vst [vmem:[%s749_s2 + $0x18] sm:$0xff] %v540_v46   ;;  %568 = vst [vmem:[%s749_s2 + $0x38] sm:$0xff] %v560_v48   ;;  %v555_v54 = vpack.c.bf16 %v263_v49, %v260_v40  ;;  %v441_v14 = vmul.f32 %v263_v49, %v263_v49 }
 0x103   :  { %563 = vst [vmem:[%s749_s2 + $0x10] sm:$0xff] %v535_v51   ;;  %v411_v56 = vadd.f32 %v607_v36, %v410_v52  ;;  %v448_v57 = vadd.f32 %v447_v50, %v433_v53 }
 0x104   :  { %567 = vst [vmem:[%s749_s2 + $0x30] sm:$0xff] %v555_v54  }
 0x105   :  { %v449_v59 = vadd.f32 %v448_v57, %v434_v55  ;;  %v412_v60 = vadd.f32 %v608_v44, %v411_v56 }
 0x107   :  { %v413_v62 = vadd.f32 %v412_v60, %v244_v19  ;;  %v450_v63 = vadd.f32 %v449_v59, %v435_v58  ;;  %v443_v19 = vmul.f32 %v616_v45, %v616_v45 }
 0x109   :  { %v451_v0 = vadd.f32 %v450_v63, %v436_v61  ;;  %v414_v1 = vadd.f32 %v413_v62, %v247_v26 }
 0x10b   :  { %v415_v4 = vadd.f32 %v611_v17, %v414_v1  ;;  %v452_v5 = vadd.f32 %v451_v0, %v437_v2 }
 0x10d   :  { %v453_v7 = vadd.f32 %v452_v5, %v438_v3  ;;  %v416_v8 = vadd.f32 %v612_v21, %v415_v4 }
 0x10f   :  { %v417_v10 = vadd.f32 %v416_v8, %v260_v40  ;;  %v454_v11 = vadd.f32 %v453_v7, %v439_v6 }
 0x111   :  { %v455_v12 = vadd.f32 %v454_v11, %v440_v9  ;;  %v418_v13 = vadd.f32 %v417_v10, %v263_v49 }
 0x113   :  { %v419_v16 = vadd.f32 %v615_v38, %v418_v13  ;;  %v456_v18 = vadd.f32 %v455_v12, %v441_v14 }
 0x115   :  { %v420_v20 = vadd.f32 %v616_v45, %v419_v16  ;;  %v457_v22 = vadd.f32 %v456_v18, %v442_v15 }
 0x117   :  { %v421_v23 = vrot.slane %v420_v20, 4  ;;  %v458_v24 = vadd.f32 %v457_v22, %v443_v19 }
 0x119   :  { %v422_v25 = vadd.f32 %v421_v23, %v420_v20  ;;  %v459_v17 = vrot.slane %v458_v24, 4 }
 0x11b   :  { %v423_v26 = vrot.slane %v422_v25, 2  ;;  %v460_v27 = vadd.f32 %v459_v17, %v458_v24 }
 0x11d   :  { %v424_v28 = vadd.f32 %v423_v26, %v422_v25  ;;  %v461_v21 = vrot.slane %v460_v27, 2 }
 0x11f   :  { %v425_v29 = vrot.slane %v424_v28, 1  ;;  %v462_v30 = vadd.f32 %v461_v21, %v460_v27 }
 0x121   :  { %v426_v31 = vadd.f32 %v425_v29, %v424_v28  ;;  %v463_v32 = vrot.slane %v462_v30, 1 }
 0x123   :  { %427 = vst [vmem:[%s750_s3] sm:$0x1] %v426_v31  ;;  %v464_v33 = vadd.f32 %v463_v32, %v462_v30 }
 0x125   :  { %465 = vst [vmem:[%s750_s3 + $0x1] sm:$0x1] %v464_v33 }

</bundles_post_ra>
